<compile_context>
chip_gen: v6e
topology: v6e:2x2x1
jax: 0.10.0
libtpu: 0.0.40
codegen_flags: <defaults>
</compile_context>

<pallas_src>
import functools

import jax
import jax.numpy as jnp
from jax.experimental import pallas as pl
from jax.experimental.pallas import tpu as pltpu

# ---------------- model config (small, TPU-friendly) ----------------
INPUT_DIM = 16
D_MODEL = 32
NHEAD = 4
NUM_LAYERS = 2
D_FF = 64
BATCH = 8

LN_EPS = 1e-5


def _round_up(v, m):
    return -(-v // m) * m


# ---------------- Pallas kernel ----------------
def _ft_kernel(x_ref, wdm_ref, wff_ref, f_ref, out_ref, *,
               num_layers, dm, dff, fin, w0_rows):
    half = dff // 2
    lay = dm + half                      # rows per layer inside the dm-wide weight slab
    bf16 = jnp.bfloat16

    def mm(a, w):
        # a: (TB, K) f32/bf16, w: (K, N) bf16 -> (TB, N) f32 (MXU, f32 accumulation)
        return jax.lax.dot_general(a.astype(bf16), w, (((1,), (0,)), ((), ())),
                                   preferred_element_type=jnp.float32)

    def ln(h):
        # LayerNorm without affine (gamma/beta folded into the following matmul).
        # Padded batch rows are constant -> var == 0; LN_EPS keeps this finite.
        mu = jnp.mean(h, axis=-1, keepdims=True)
        c = h - mu
        var = jnp.mean(c * c, axis=-1, keepdims=True)
        return c * jax.lax.rsqrt(var + LN_EPS)

    x = x_ref[...]                                                 # (TB, fin) bf16
    # numerical embedder
    h = mm(x, wdm_ref[0:fin, :]) + f_ref[0:1, :dm]                 # (TB, dm) f32

    for l in range(num_layers):
        ra = w0_rows + l * lay
        # ---- attention block (seq_len == 1 => softmax == 1), LN1 affine folded;
        #      inner + outer residual => + 2h. (dropout is identity in eval mode) ----
        h = mm(ln(h), wdm_ref[ra:ra + dm, :]) + f_ref[4 + l:5 + l, :dm] + 2.0 * h

        # ---- GEGLU feed-forward: single fused up-projection, LN2 affine folded ----
        p = (mm(ln(h), wff_ref[l])
             + f_ref[4 + num_layers + l:5 + num_layers + l, :])    # (TB, dff)
        g = p[:, :half] * jax.nn.sigmoid(p[:, half:])              # GEGLU, (TB, dff/2)
        h = (mm(g, wdm_ref[ra + dm:ra + dm + half, :])
             + f_ref[4 + 2 * num_layers + l:5 + 2 * num_layers + l, :dm] + h)

    # ---- to_logits: LN -> ReLU -> Linear(dm, 1) -> Sigmoid, computed transposed so
    #      the output store / DMA is lane-dense (tb lanes) instead of 1 lane wide. ----
    n3 = ln(h) * f_ref[1:2, :dm] + f_ref[2:3, :dm]
    r = jnp.maximum(n3, 0.0).astype(bf16)                          # (TB, dm)
    r3 = w0_rows + num_layers * lay
    w3 = wdm_ref[r3:r3 + 8, :]                                     # (8, dm); rows 1..7 zero
    yt = jax.lax.dot_general(w3, r, (((1,), (1,)), ((), ())),
                             preferred_element_type=jnp.float32)   # (8, TB)
    y = yt[0:1, :] + f_ref[3:4, 0:1]                               # (1, TB), + b3
    out_ref[...] = jax.nn.sigmoid(y).reshape(1, 1, -1)


# ---------------- host-side weight preparation (fold + pack into slabs) --------------
def _prep(params, nhead):
    L, _, dm = params["wqkv"].shape
    hd = dm // nhead
    dff = params["w1"].shape[1]
    half = dff // 2
    fin = params["w0"].shape[1]
    f32, bf16 = jnp.float32, jnp.bfloat16

    # seq_len == 1 attention fold: softmax == 1 so attention output == V, and the whole
    # block is one matmul with Wa = Wout @ Wv (v-rows of the interleaved qkv weights).
    wv = params["wqkv"].reshape(L, nhead, 3, hd, dm)[:, :, 2].reshape(L, dm, dm)
    wa_kn = jnp.einsum("loc,lci->lio", params["wout"], wv)          # (L, K=dm, N=dm)

    # Fold LN1 affine: n = nh*g1 + b1  =>  n @ Wa = nh @ (g1*Wa) + b1 @ Wa
    g1 = params["ln1_g"][:, 0, :]
    b1 = params["ln1_b"][:, 0, :]
    wa_fold = wa_kn * g1[:, :, None]
    b_attn = jnp.einsum("lk,lkn->ln", b1, wa_kn)                    # (L, dm)

    # Fold LN2 affine into the (single, fused) GEGLU up-projection.
    w1_kn = jnp.swapaxes(params["w1"], 1, 2)                        # (L, dm, dff)
    g2 = params["ln2_g"][:, 0, :]
    b2 = params["ln2_b"][:, 0, :]
    w1_fold = w1_kn * g2[:, :, None]
    b_ff1 = jnp.einsum("lk,lkn->ln", b2, w1_kn) + params["b1"][:, 0, :]   # (L, dff)

    w2_kn = jnp.swapaxes(params["w2"], 1, 2)                        # (L, dff/2, dm)
    b_ff2 = params["b2"][:, 0, :]                                   # (L, dm)

    # Embedder and final projection (KN layout; w3 zero-padded to 8 rows for alignment).
    w0_rows = _round_up(fin, 16)                                    # keep bf16 sublane-pair aligned
    w0_kn = jnp.zeros((w0_rows, dm), f32).at[0:fin, :].set(params["w0"].T)
    w3_pad = jnp.zeros((8, dm), f32).at[0:1, :].set(params["w3"])

    # ---- bf16 slab #1: all (K x dm) matmul weights stacked along the sublane axis ----
    blocks = [w0_kn]
    for l in range(L):
        blocks += [wa_fold[l], w2_kn[l]]
    blocks.append(w3_pad)
    w_dm_slab = jnp.concatenate(blocks, axis=0).astype(bf16)        # (w0_rows + L*(dm+dff/2) + 8, dm)

    # ---- bf16 slab #2: the (dm x dff) GEGLU up-projection per layer ----
    w_ff_slab = w1_fold.astype(bf16)                                # (L, dm, dff)

    # ---- f32 slab: all bias / LayerNorm vectors (width dff, narrow rows zero-padded) ----
    def row(v):
        v = v.reshape(1, -1)
        return jnp.pad(v, ((0, 0), (0, dff - v.shape[1])))
    frows = ([row(params["b0"][0]),                                  # row 0: embedder bias
              row(params["ln3_g"][0]),                               # row 1: LN3 gamma
              row(params["ln3_b"][0]),                               # row 2: LN3 beta
              jnp.broadcast_to(params["b3"].reshape(1, 1), (1, dff))]  # row 3: b3 (scalar)
             + [row(b_attn[l]) for l in range(L)]                    # rows 4..4+L-1
             + [row(b_ff1[l]) for l in range(L)]                     # rows 4+L..
             + [row(b_ff2[l]) for l in range(L)])                    # rows 4+2L..
    f_slab = jnp.concatenate(frows, axis=0).astype(f32)              # (4 + 3L, dff)

    cfg = dict(num_layers=L, dm=dm, dff=dff, fin=fin, w0_rows=w0_rows)
    return w_dm_slab, w_ff_slab, f_slab, cfg


# ---------------- wrapper ----------------
def ft_transformer_forward(x, params, *, nhead=NHEAD):
    B, fin = x.shape
    wdm, wff, fsl, cfg = _prep(params, nhead)

    # ---- TC-aware batch tiling: grid >= 2 (and even) whenever padded batch >= 16 so
    #      both v7x TensorCores are used; tiles up to 1024 rows for large batches. ----
    b8 = _round_up(B, 8)
    if b8 < 16:
        tb, grid_n = b8, 1
    else:
        grid_n = max(2, _round_up(b8, 1024) // 1024)
        if grid_n % 2:
            grid_n += 1                       # even tile count -> balanced across 2 TCs
        tb = _round_up(-(-b8 // grid_n), 16)  # multiple of 16 (bf16 sublane packing)
    b_pad = grid_n * tb

    xb = x.astype(jnp.bfloat16)
    if b_pad != B:
        xb = jnp.pad(xb, ((0, b_pad - B), (0, 0)))

    def resident(a):
        # Full-array block with a constant index_map: stays VMEM-resident across
        # batch-grid steps (no per-step DMA re-fetch).
        nd = a.ndim
        return pl.BlockSpec(a.shape, lambda i, _nd=nd: (0,) * _nd)

    out = pl.pallas_call(
        functools.partial(_ft_kernel, **cfg),
        out_shape=jax.ShapeDtypeStruct((grid_n, 1, tb), jnp.float32),
        grid=(grid_n,),
        in_specs=[pl.BlockSpec((tb, fin), lambda i: (i, 0)),
                  resident(wdm), resident(wff), resident(fsl)],
        out_specs=pl.BlockSpec((1, 1, tb), lambda i: (i, 0, 0)),
        compiler_params=pltpu.CompilerParams(
            dimension_semantics=("parallel",)),   # shard batch tiles across TCs (v7x)
    )(xb, wdm, wff, fsl)
    return out.reshape(b_pad)[:B]                 # the `.squeeze(1)` of the PyTorch forward


# ---------------- deterministic parameter init (PyTorch-layout params) ----------------
def init_params(key):
    ks = iter(jax.random.split(key, 32))
    f32 = jnp.float32

    def w(shape, scale=0.05):
        return jax.random.normal(next(ks), shape, f32) * scale

    L, dm, dff, fin = NUM_LAYERS, D_MODEL, D_FF, INPUT_DIM
    return {
        "w0": w((dm, fin)),
        "b0": w((1, dm)),
        "ln1_g": 1.0 + w((L, 1, dm), 0.1),
        "ln1_b": w((L, 1, dm), 0.1),
        "wqkv": w((L, 3 * dm, dm)),
        "wout": w((L, dm, dm)),
        "ln2_g": 1.0 + w((L, 1, dm), 0.1),
        "ln2_b": w((L, 1, dm), 0.1),
        "w1": w((L, dff, dm)),
        "b1": w((L, 1, dff)),
        "w2": w((L, dm, dff // 2)),
        "b2": w((L, 1, dm)),
        "ln3_g": 1.0 + w((1, dm), 0.1),
        "ln3_b": w((1, dm), 0.1),
        "w3": w((1, dm)),
        "b3": w((1, 1)),
    }


# ---------------- pure-JAX f32 reference (mirrors the PyTorch forward exactly) --------
def _ref_layer_norm(h, g, b):
    mu = jnp.mean(h, axis=-1, keepdims=True)
    var = jnp.mean((h - mu) ** 2, axis=-1, keepdims=True)
    return (h - mu) / jnp.sqrt(var + LN_EPS) * g + b


def ref_forward(x, p, nhead=NHEAD):
    B = x.shape[0]
    dm = p["w0"].shape[0]
    hd = dm // nhead
    h = x @ p["w0"].T + p["b0"][0]
    L = p["wqkv"].shape[0]
    for l in range(L):
        n = _ref_layer_norm(h, p["ln1_g"][l, 0], p["ln1_b"][l, 0])
        qkv = n @ p["wqkv"][l].T
        qkv = qkv.reshape(B, 1, nhead, 3, hd).transpose(2, 0, 3, 1, 4)  # (h,B,3,1,hd)
        q, k, v = qkv[:, :, 0], qkv[:, :, 1], qkv[:, :, 2]
        s = jnp.einsum("hbid,hbjd->bhij", q, k) / hd ** 0.5
        a = jax.nn.softmax(s, axis=-1)
        o = jnp.einsum("bhij,hbjd->bhid", a, v)
        o = o.transpose(0, 2, 1, 3).reshape(B, dm)
        attn_out = o @ p["wout"][l].T + h
        h = attn_out + h
        n2 = _ref_layer_norm(h, p["ln2_g"][l, 0], p["ln2_b"][l, 0])
        h1 = n2 @ p["w1"][l].T + p["b1"][l, 0]
        half = h1.shape[-1] // 2
        ge = h1[:, :half] * jax.nn.sigmoid(h1[:, half:])
        h = ge @ p["w2"][l].T + p["b2"][l, 0] + h
    n3 = _ref_layer_norm(h, p["ln3_g"][0], p["ln3_b"][0])
    y = jnp.maximum(n3, 0.0) @ p["w3"].T + p["b3"][0]
    return jax.nn.sigmoid(y)[:, 0]


if __name__ == "__main__":
    key = jax.random.PRNGKey(0)
    kx, kp = jax.random.split(key)
    params = init_params(kp)

    fwd = jax.jit(functools.partial(ft_transformer_forward, nhead=NHEAD))

    # Check both the single-tile path (BATCH=8 -> grid=(1,)) and the multi-tile / padded
    # path (48 -> grid=(2,), pad to 64) against the pure-f32 reference.
    for bsz in (BATCH, 48):
        xb = jax.random.normal(jax.random.fold_in(kx, bsz), (bsz, INPUT_DIM), jnp.float32)
        out = jax.block_until_ready(fwd(xb, params))
        ref = jax.block_until_ready(ref_forward(xb, params, nhead=NHEAD))
        err = float(jnp.max(jnp.abs(out - ref)))
        assert out.shape == (bsz,), out.shape
        # bf16 matmul operands (f32 accumulation) + bf16-rounded folded gammas vs the
        # pure-f32 reference: loose but safe tolerance; observed error is ~1e-3.
        assert err < 2e-2, f"batch {bsz}: mismatch vs reference: {err}"
    print("KERNEL_OK")
</pallas_src>

<mosaic_0001>
module attributes {stable_mosaic.version = 11 : i64} {
  func.func @_ft_kernel(%arg0: i32, %arg1: memref<8x16xbf16, #tpu.memory_space<vmem>>, %arg2: memref<152x32xbf16, #tpu.memory_space<vmem>>, %arg3: memref<2x32x64xbf16, #tpu.memory_space<vmem>>, %arg4: memref<10x64xf32, #tpu.memory_space<vmem>>, %arg5: memref<1x1x8xf32, #tpu.memory_space<vmem>>) attributes {dimension_semantics = [#tpu.dimension_semantics<parallel>], iteration_bounds = array<i64: 1>, scalar_prefetch = 0 : i64, scratch_operands = 0 : i64, tpu.core_type = #tpu.core_type<tc>, window_params = [{transform_indices = @transform_0, window_bounds = array<i64: 8, 16>}, {pipeline_mode = #tpu.pipeline_mode<synchronous>, transform_indices = @transform_1, window_bounds = array<i64: 152, 32>}, {pipeline_mode = #tpu.pipeline_mode<synchronous>, transform_indices = @transform_2, window_bounds = array<i64: 2, 32, 64>}, {pipeline_mode = #tpu.pipeline_mode<synchronous>, transform_indices = @transform_3, window_bounds = array<i64: 10, 64>}, {transform_indices = @transform_4, window_bounds = array<i64: 1, 1, 8>}]} {
    %c0 = arith.constant 0 : index
    %c0_0 = arith.constant 0 : index
    %0 = vector.load %arg1[%c0, %c0_0] : memref<8x16xbf16, #tpu.memory_space<vmem>>, vector<8x16xbf16>
    %c0_1 = arith.constant 0 : index
    %c0_2 = arith.constant 0 : index
    %1 = vector.load %arg2[%c0_1, %c0_2] : memref<152x32xbf16, #tpu.memory_space<vmem>>, vector<16x32xbf16>
    %cst = arith.constant dense<0.000000e+00> : vector<8x32xf32>
    %2 = tpu.matmul %0, %1, %cst {dimension_numbers = #tpu.dot_dimension_numbers<[1], [0], [0], [1], [0, 0, 1, 1], [], []>} : vector<8x16xbf16>, vector<16x32xbf16>, vector<8x32xf32> -> vector<8x32xf32>
    %c0_3 = arith.constant 0 : index
    %c0_4 = arith.constant 0 : index
    %3 = vector.load %arg4[%c0_3, %c0_4] : memref<10x64xf32, #tpu.memory_space<vmem>>, vector<1x32xf32>
    %4 = vector.broadcast %3 : vector<1x32xf32> to vector<8x32xf32>
    %5 = arith.addf %2, %4 : vector<8x32xf32>
    %cst_5 = arith.constant dense<0.000000e+00> : vector<8xf32>
    %6 = vector.multi_reduction <add>, %5, %cst_5 [1] : vector<8x32xf32> to vector<8xf32>
    %7 = vector.shape_cast %6 : vector<8xf32> to vector<8x1xf32>
    %cst_6 = arith.constant 3.200000e+01 : f32
    %8 = vector.broadcast %cst_6 : f32 to vector<8x1xf32>
    %9 = arith.divf %7, %8 : vector<8x1xf32>
    %10 = vector.broadcast %9 : vector<8x1xf32> to vector<8x32xf32>
    %11 = arith.subf %5, %10 : vector<8x32xf32>
    %12 = arith.mulf %11, %11 : vector<8x32xf32>
    %cst_7 = arith.constant dense<0.000000e+00> : vector<8xf32>
    %13 = vector.multi_reduction <add>, %12, %cst_7 [1] : vector<8x32xf32> to vector<8xf32>
    %14 = vector.shape_cast %13 : vector<8xf32> to vector<8x1xf32>
    %cst_8 = arith.constant 3.200000e+01 : f32
    %15 = vector.broadcast %cst_8 : f32 to vector<8x1xf32>
    %16 = arith.divf %14, %15 : vector<8x1xf32>
    %cst_9 = arith.constant 9.99999974E-6 : f32
    %17 = vector.broadcast %cst_9 : f32 to vector<8x1xf32>
    %18 = arith.addf %16, %17 : vector<8x1xf32>
    %19 = math.rsqrt %18 : vector<8x1xf32>
    %20 = vector.broadcast %19 : vector<8x1xf32> to vector<8x32xf32>
    %21 = arith.mulf %11, %20 : vector<8x32xf32>
    %c16 = arith.constant 16 : index
    %c0_10 = arith.constant 0 : index
    %22 = vector.load %arg2[%c16, %c0_10] : memref<152x32xbf16, #tpu.memory_space<vmem>>, vector<32x32xbf16>
    %23 = arith.truncf %21 : vector<8x32xf32> to vector<8x32xbf16>
    %cst_11 = arith.constant dense<0.000000e+00> : vector<8x32xf32>
    %24 = tpu.matmul %23, %22, %cst_11 {dimension_numbers = #tpu.dot_dimension_numbers<[1], [0], [0], [1], [0, 0, 1, 1], [], []>} : vector<8x32xbf16>, vector<32x32xbf16>, vector<8x32xf32> -> vector<8x32xf32>
    %c4 = arith.constant 4 : index
    %c0_12 = arith.constant 0 : index
    %25 = vector.load %arg4[%c4, %c0_12] : memref<10x64xf32, #tpu.memory_space<vmem>>, vector<1x32xf32>
    %26 = vector.broadcast %25 : vector<1x32xf32> to vector<8x32xf32>
    %27 = arith.addf %24, %26 : vector<8x32xf32>
    %cst_13 = arith.constant 2.000000e+00 : f32
    %28 = vector.broadcast %cst_13 : f32 to vector<8x32xf32>
    %29 = arith.mulf %28, %5 : vector<8x32xf32>
    %30 = arith.addf %27, %29 : vector<8x32xf32>
    %cst_14 = arith.constant dense<0.000000e+00> : vector<8xf32>
    %31 = vector.multi_reduction <add>, %30, %cst_14 [1] : vector<8x32xf32> to vector<8xf32>
    %32 = vector.shape_cast %31 : vector<8xf32> to vector<8x1xf32>
    %cst_15 = arith.constant 3.200000e+01 : f32
    %33 = vector.broadcast %cst_15 : f32 to vector<8x1xf32>
    %34 = arith.divf %32, %33 : vector<8x1xf32>
    %35 = vector.broadcast %34 : vector<8x1xf32> to vector<8x32xf32>
    %36 = arith.subf %30, %35 : vector<8x32xf32>
    %37 = arith.mulf %36, %36 : vector<8x32xf32>
    %cst_16 = arith.constant dense<0.000000e+00> : vector<8xf32>
    %38 = vector.multi_reduction <add>, %37, %cst_16 [1] : vector<8x32xf32> to vector<8xf32>
    %39 = vector.shape_cast %38 : vector<8xf32> to vector<8x1xf32>
    %cst_17 = arith.constant 3.200000e+01 : f32
    %40 = vector.broadcast %cst_17 : f32 to vector<8x1xf32>
    %41 = arith.divf %39, %40 : vector<8x1xf32>
    %cst_18 = arith.constant 9.99999974E-6 : f32
    %42 = vector.broadcast %cst_18 : f32 to vector<8x1xf32>
    %43 = arith.addf %41, %42 : vector<8x1xf32>
    %44 = math.rsqrt %43 : vector<8x1xf32>
    %45 = vector.broadcast %44 : vector<8x1xf32> to vector<8x32xf32>
    %46 = arith.mulf %36, %45 : vector<8x32xf32>
    %c0_19 = arith.constant 0 : index
    %c0_20 = arith.constant 0 : index
    %c0_21 = arith.constant 0 : index
    %47 = vector.load %arg3[%c0_19, %c0_20, %c0_21] : memref<2x32x64xbf16, #tpu.memory_space<vmem>>, vector<1x32x64xbf16>
    %48 = vector.shape_cast %47 : vector<1x32x64xbf16> to vector<32x64xbf16>
    %49 = arith.truncf %46 : vector<8x32xf32> to vector<8x32xbf16>
    %cst_22 = arith.constant dense<0.000000e+00> : vector<8x64xf32>
    %50 = tpu.matmul %49, %48, %cst_22 {dimension_numbers = #tpu.dot_dimension_numbers<[1], [0], [0], [1], [0, 0, 1, 1], [], []>} : vector<8x32xbf16>, vector<32x64xbf16>, vector<8x64xf32> -> vector<8x64xf32>
    %c6 = arith.constant 6 : index
    %c0_23 = arith.constant 0 : index
    %51 = vector.load %arg4[%c6, %c0_23] : memref<10x64xf32, #tpu.memory_space<vmem>>, vector<1x64xf32>
    %52 = vector.broadcast %51 : vector<1x64xf32> to vector<8x64xf32>
    %53 = arith.addf %50, %52 : vector<8x64xf32>
    %54 = vector.extract_strided_slice %53 {offsets = [0, 0], sizes = [8, 32], strides = [1, 1]} : vector<8x64xf32> to vector<8x32xf32>
    %55 = vector.extract_strided_slice %53 {offsets = [0, 32], sizes = [8, 32], strides = [1, 1]} : vector<8x64xf32> to vector<8x32xf32>
    %56 = arith.negf %55 : vector<8x32xf32>
    %57 = math.exp %56 : vector<8x32xf32>
    %cst_24 = arith.constant 1.000000e+00 : f32
    %58 = vector.broadcast %cst_24 : f32 to vector<8x32xf32>
    %59 = arith.addf %58, %57 : vector<8x32xf32>
    %60 = arith.divf %58, %59 : vector<8x32xf32>
    %61 = arith.mulf %54, %60 : vector<8x32xf32>
    %c48 = arith.constant 48 : index
    %c0_25 = arith.constant 0 : index
    %62 = vector.load %arg2[%c48, %c0_25] : memref<152x32xbf16, #tpu.memory_space<vmem>>, vector<32x32xbf16>
    %63 = arith.truncf %61 : vector<8x32xf32> to vector<8x32xbf16>
    %cst_26 = arith.constant dense<0.000000e+00> : vector<8x32xf32>
    %64 = tpu.matmul %63, %62, %cst_26 {dimension_numbers = #tpu.dot_dimension_numbers<[1], [0], [0], [1], [0, 0, 1, 1], [], []>} : vector<8x32xbf16>, vector<32x32xbf16>, vector<8x32xf32> -> vector<8x32xf32>
    %c8 = arith.constant 8 : index
    %c0_27 = arith.constant 0 : index
    %65 = vector.load %arg4[%c8, %c0_27] : memref<10x64xf32, #tpu.memory_space<vmem>>, vector<1x32xf32>
    %66 = vector.broadcast %65 : vector<1x32xf32> to vector<8x32xf32>
    %67 = arith.addf %64, %66 : vector<8x32xf32>
    %68 = arith.addf %67, %30 : vector<8x32xf32>
    %cst_28 = arith.constant dense<0.000000e+00> : vector<8xf32>
    %69 = vector.multi_reduction <add>, %68, %cst_28 [1] : vector<8x32xf32> to vector<8xf32>
    %70 = vector.shape_cast %69 : vector<8xf32> to vector<8x1xf32>
    %cst_29 = arith.constant 3.200000e+01 : f32
    %71 = vector.broadcast %cst_29 : f32 to vector<8x1xf32>
    %72 = arith.divf %70, %71 : vector<8x1xf32>
    %73 = vector.broadcast %72 : vector<8x1xf32> to vector<8x32xf32>
    %74 = arith.subf %68, %73 : vector<8x32xf32>
    %75 = arith.mulf %74, %74 : vector<8x32xf32>
    %cst_30 = arith.constant dense<0.000000e+00> : vector<8xf32>
    %76 = vector.multi_reduction <add>, %75, %cst_30 [1] : vector<8x32xf32> to vector<8xf32>
    %77 = vector.shape_cast %76 : vector<8xf32> to vector<8x1xf32>
    %cst_31 = arith.constant 3.200000e+01 : f32
    %78 = vector.broadcast %cst_31 : f32 to vector<8x1xf32>
    %79 = arith.divf %77, %78 : vector<8x1xf32>
    %cst_32 = arith.constant 9.99999974E-6 : f32
    %80 = vector.broadcast %cst_32 : f32 to vector<8x1xf32>
    %81 = arith.addf %79, %80 : vector<8x1xf32>
    %82 = math.rsqrt %81 : vector<8x1xf32>
    %83 = vector.broadcast %82 : vector<8x1xf32> to vector<8x32xf32>
    %84 = arith.mulf %74, %83 : vector<8x32xf32>
    %c80 = arith.constant 80 : index
    %c0_33 = arith.constant 0 : index
    %85 = vector.load %arg2[%c80, %c0_33] : memref<152x32xbf16, #tpu.memory_space<vmem>>, vector<32x32xbf16>
    %86 = arith.truncf %84 : vector<8x32xf32> to vector<8x32xbf16>
    %cst_34 = arith.constant dense<0.000000e+00> : vector<8x32xf32>
    %87 = tpu.matmul %86, %85, %cst_34 {dimension_numbers = #tpu.dot_dimension_numbers<[1], [0], [0], [1], [0, 0, 1, 1], [], []>} : vector<8x32xbf16>, vector<32x32xbf16>, vector<8x32xf32> -> vector<8x32xf32>
    %c5 = arith.constant 5 : index
    %c0_35 = arith.constant 0 : index
    %88 = vector.load %arg4[%c5, %c0_35] : memref<10x64xf32, #tpu.memory_space<vmem>>, vector<1x32xf32>
    %89 = vector.broadcast %88 : vector<1x32xf32> to vector<8x32xf32>
    %90 = arith.addf %87, %89 : vector<8x32xf32>
    %cst_36 = arith.constant 2.000000e+00 : f32
    %91 = vector.broadcast %cst_36 : f32 to vector<8x32xf32>
    %92 = arith.mulf %91, %68 : vector<8x32xf32>
    %93 = arith.addf %90, %92 : vector<8x32xf32>
    %cst_37 = arith.constant dense<0.000000e+00> : vector<8xf32>
    %94 = vector.multi_reduction <add>, %93, %cst_37 [1] : vector<8x32xf32> to vector<8xf32>
    %95 = vector.shape_cast %94 : vector<8xf32> to vector<8x1xf32>
    %cst_38 = arith.constant 3.200000e+01 : f32
    %96 = vector.broadcast %cst_38 : f32 to vector<8x1xf32>
    %97 = arith.divf %95, %96 : vector<8x1xf32>
    %98 = vector.broadcast %97 : vector<8x1xf32> to vector<8x32xf32>
    %99 = arith.subf %93, %98 : vector<8x32xf32>
    %100 = arith.mulf %99, %99 : vector<8x32xf32>
    %cst_39 = arith.constant dense<0.000000e+00> : vector<8xf32>
    %101 = vector.multi_reduction <add>, %100, %cst_39 [1] : vector<8x32xf32> to vector<8xf32>
    %102 = vector.shape_cast %101 : vector<8xf32> to vector<8x1xf32>
    %cst_40 = arith.constant 3.200000e+01 : f32
    %103 = vector.broadcast %cst_40 : f32 to vector<8x1xf32>
    %104 = arith.divf %102, %103 : vector<8x1xf32>
    %cst_41 = arith.constant 9.99999974E-6 : f32
    %105 = vector.broadcast %cst_41 : f32 to vector<8x1xf32>
    %106 = arith.addf %104, %105 : vector<8x1xf32>
    %107 = math.rsqrt %106 : vector<8x1xf32>
    %108 = vector.broadcast %107 : vector<8x1xf32> to vector<8x32xf32>
    %109 = arith.mulf %99, %108 : vector<8x32xf32>
    %c1 = arith.constant 1 : index
    %c0_42 = arith.constant 0 : index
    %c0_43 = arith.constant 0 : index
    %110 = vector.load %arg3[%c1, %c0_42, %c0_43] : memref<2x32x64xbf16, #tpu.memory_space<vmem>>, vector<1x32x64xbf16>
    %111 = vector.shape_cast %110 : vector<1x32x64xbf16> to vector<32x64xbf16>
    %112 = arith.truncf %109 : vector<8x32xf32> to vector<8x32xbf16>
    %cst_44 = arith.constant dense<0.000000e+00> : vector<8x64xf32>
    %113 = tpu.matmul %112, %111, %cst_44 {dimension_numbers = #tpu.dot_dimension_numbers<[1], [0], [0], [1], [0, 0, 1, 1], [], []>} : vector<8x32xbf16>, vector<32x64xbf16>, vector<8x64xf32> -> vector<8x64xf32>
    %c7 = arith.constant 7 : index
    %c0_45 = arith.constant 0 : index
    %114 = vector.load %arg4[%c7, %c0_45] : memref<10x64xf32, #tpu.memory_space<vmem>>, vector<1x64xf32>
    %115 = vector.broadcast %114 : vector<1x64xf32> to vector<8x64xf32>
    %116 = arith.addf %113, %115 : vector<8x64xf32>
    %117 = vector.extract_strided_slice %116 {offsets = [0, 0], sizes = [8, 32], strides = [1, 1]} : vector<8x64xf32> to vector<8x32xf32>
    %118 = vector.extract_strided_slice %116 {offsets = [0, 32], sizes = [8, 32], strides = [1, 1]} : vector<8x64xf32> to vector<8x32xf32>
    %119 = arith.negf %118 : vector<8x32xf32>
    %120 = math.exp %119 : vector<8x32xf32>
    %cst_46 = arith.constant 1.000000e+00 : f32
    %121 = vector.broadcast %cst_46 : f32 to vector<8x32xf32>
    %122 = arith.addf %121, %120 : vector<8x32xf32>
    %123 = arith.divf %121, %122 : vector<8x32xf32>
    %124 = arith.mulf %117, %123 : vector<8x32xf32>
    %c112 = arith.constant 112 : index
    %c0_47 = arith.constant 0 : index
    %125 = vector.load %arg2[%c112, %c0_47] : memref<152x32xbf16, #tpu.memory_space<vmem>>, vector<32x32xbf16>
    %126 = arith.truncf %124 : vector<8x32xf32> to vector<8x32xbf16>
    %cst_48 = arith.constant dense<0.000000e+00> : vector<8x32xf32>
    %127 = tpu.matmul %126, %125, %cst_48 {dimension_numbers = #tpu.dot_dimension_numbers<[1], [0], [0], [1], [0, 0, 1, 1], [], []>} : vector<8x32xbf16>, vector<32x32xbf16>, vector<8x32xf32> -> vector<8x32xf32>
    %c9 = arith.constant 9 : index
    %c0_49 = arith.constant 0 : index
    %128 = vector.load %arg4[%c9, %c0_49] : memref<10x64xf32, #tpu.memory_space<vmem>>, vector<1x32xf32>
    %129 = vector.broadcast %128 : vector<1x32xf32> to vector<8x32xf32>
    %130 = arith.addf %127, %129 : vector<8x32xf32>
    %131 = arith.addf %130, %93 : vector<8x32xf32>
    %cst_50 = arith.constant dense<0.000000e+00> : vector<8xf32>
    %132 = vector.multi_reduction <add>, %131, %cst_50 [1] : vector<8x32xf32> to vector<8xf32>
    %133 = vector.shape_cast %132 : vector<8xf32> to vector<8x1xf32>
    %cst_51 = arith.constant 3.200000e+01 : f32
    %134 = vector.broadcast %cst_51 : f32 to vector<8x1xf32>
    %135 = arith.divf %133, %134 : vector<8x1xf32>
    %136 = vector.broadcast %135 : vector<8x1xf32> to vector<8x32xf32>
    %137 = arith.subf %131, %136 : vector<8x32xf32>
    %138 = arith.mulf %137, %137 : vector<8x32xf32>
    %cst_52 = arith.constant dense<0.000000e+00> : vector<8xf32>
    %139 = vector.multi_reduction <add>, %138, %cst_52 [1] : vector<8x32xf32> to vector<8xf32>
    %140 = vector.shape_cast %139 : vector<8xf32> to vector<8x1xf32>
    %cst_53 = arith.constant 3.200000e+01 : f32
    %141 = vector.broadcast %cst_53 : f32 to vector<8x1xf32>
    %142 = arith.divf %140, %141 : vector<8x1xf32>
    %cst_54 = arith.constant 9.99999974E-6 : f32
    %143 = vector.broadcast %cst_54 : f32 to vector<8x1xf32>
    %144 = arith.addf %142, %143 : vector<8x1xf32>
    %145 = math.rsqrt %144 : vector<8x1xf32>
    %146 = vector.broadcast %145 : vector<8x1xf32> to vector<8x32xf32>
    %147 = arith.mulf %137, %146 : vector<8x32xf32>
    %c1_55 = arith.constant 1 : index
    %c0_56 = arith.constant 0 : index
    %148 = vector.load %arg4[%c1_55, %c0_56] : memref<10x64xf32, #tpu.memory_space<vmem>>, vector<1x32xf32>
    %149 = vector.broadcast %148 : vector<1x32xf32> to vector<8x32xf32>
    %150 = arith.mulf %147, %149 : vector<8x32xf32>
    %c2 = arith.constant 2 : index
    %c0_57 = arith.constant 0 : index
    %151 = vector.load %arg4[%c2, %c0_57] : memref<10x64xf32, #tpu.memory_space<vmem>>, vector<1x32xf32>
    %152 = vector.broadcast %151 : vector<1x32xf32> to vector<8x32xf32>
    %153 = arith.addf %150, %152 : vector<8x32xf32>
    %cst_58 = arith.constant 0.000000e+00 : f32
    %154 = vector.broadcast %cst_58 : f32 to vector<8x32xf32>
    %155 = arith.maximumf %153, %154 : vector<8x32xf32>
    %156 = arith.truncf %155 : vector<8x32xf32> to vector<8x32xbf16>
    %c144 = arith.constant 144 : index
    %c0_59 = arith.constant 0 : index
    %157 = vector.load %arg2[%c144, %c0_59] : memref<152x32xbf16, #tpu.memory_space<vmem>>, vector<8x32xbf16>
    %cst_60 = arith.constant dense<0.000000e+00> : vector<8x8xf32>
    %158 = tpu.matmul %157, %156, %cst_60 {dimension_numbers = #tpu.dot_dimension_numbers<[1], [1], [0], [0], [0, 0, 1, 0], [], []>} : vector<8x32xbf16>, vector<8x32xbf16>, vector<8x8xf32> -> vector<8x8xf32>
    %159 = vector.extract_strided_slice %158 {offsets = [0, 0], sizes = [1, 8], strides = [1, 1]} : vector<8x8xf32> to vector<1x8xf32>
    %c3 = arith.constant 3 : index
    %c0_61 = arith.constant 0 : index
    %160 = vector.load %arg4[%c3, %c0_61] : memref<10x64xf32, #tpu.memory_space<vmem>>, vector<1x1xf32>
    %161 = vector.broadcast %160 : vector<1x1xf32> to vector<1x8xf32>
    %162 = arith.addf %159, %161 : vector<1x8xf32>
    %163 = arith.negf %162 : vector<1x8xf32>
    %164 = math.exp %163 : vector<1x8xf32>
    %cst_62 = arith.constant 1.000000e+00 : f32
    %165 = vector.broadcast %cst_62 : f32 to vector<1x8xf32>
    %166 = arith.addf %165, %164 : vector<1x8xf32>
    %167 = arith.divf %165, %166 : vector<1x8xf32>
    %168 = vector.shape_cast %167 : vector<1x8xf32> to vector<1x1x8xf32>
    %c0_63 = arith.constant 0 : index
    %c0_64 = arith.constant 0 : index
    %c0_65 = arith.constant 0 : index
    %169 = vector.load %arg5[%c0_63, %c0_64, %c0_65] : memref<1x1x8xf32, #tpu.memory_space<vmem>>, vector<1x1x8xf32>
    tpu.vector_store %arg5[%c0_63, %c0_64, %c0_65], %168 {strides = array<i32>} : memref<1x1x8xf32, #tpu.memory_space<vmem>>, vector<1x1x8xf32>,
    return
  }
  func.func @transform_0(%arg0: i32) -> (i32, i32) {
    %c0_i32 = arith.constant 0 : i32
    %c0_i32_0 = arith.constant 0 : i32
    return %arg0, %c0_i32 : i32, i32
  }
  func.func @transform_1(%arg0: i32) -> (i32, i32) {
    %c0_i32 = arith.constant 0 : i32
    %c0_i32_0 = arith.constant 0 : i32
    %c0_i32_1 = arith.constant 0 : i32
    return %c0_i32, %c0_i32_0 : i32, i32
  }
  func.func @transform_2(%arg0: i32) -> (i32, i32, i32) {
    %c0_i32 = arith.constant 0 : i32
    %c0_i32_0 = arith.constant 0 : i32
    %c0_i32_1 = arith.constant 0 : i32
    %c0_i32_2 = arith.constant 0 : i32
    return %c0_i32, %c0_i32_0, %c0_i32_1 : i32, i32, i32
  }
  func.func @transform_3(%arg0: i32) -> (i32, i32) {
    %c0_i32 = arith.constant 0 : i32
    %c0_i32_0 = arith.constant 0 : i32
    %c0_i32_1 = arith.constant 0 : i32
    return %c0_i32, %c0_i32_0 : i32, i32
  }
  func.func @transform_4(%arg0: i32) -> (i32, i32, i32) {
    %c0_i32 = arith.constant 0 : i32
    %c0_i32_0 = arith.constant 0 : i32
    %c0_i32_1 = arith.constant 0 : i32
    return %arg0, %c0_i32, %c0_i32_0 : i32, i32, i32
  }
}

</mosaic_0001>

<bundles_post_ra>
// kernel: ft_transformer_forward.1
= control target key start
LH: loop header
LB: loop body
LE: loop exit
PB: predicated region body
PF: predicated region fallthrough
CT: control target
= control target key end

     0   :  { %v835_v1 = vmov 0.0   ;;  %vm33_vm0 = vcmask 130048   ;;  %vm836_vm1 = vmmov 0   ;;  %s993_s0 = inlined_call_operand.vmem [shape: bf16[8,16], index: 0, kind: input, shape index: {}]   ;;  %s994_s1 = inlined_call_operand.vmem [shape: bf16[152,32], index: 1, kind: input, shape index: {}]   ;;  %s995_s2 = inlined_call_operand.vmem [shape: bf16[2,32,64], index: 2, kind: input, shape index: {}]   ;;  %s996_s3 = inlined_call_operand.vmem [shape: f32[10,64], index: 3, kind: input, shape index: {}]   ;;  %s997_s4 = inlined_call_operand.hbm [shape: f32[1,1,8], index: 4, kind: output, shape index: {}]  }
   0x1   :  { %v778_v0 = vld [vmem:[%s994_s1] sm:$0xff]   ;;  %712 = vmatprep.subr.bf16.mxu0 %v835_v1  ;;  %718 = vmatprep.subr.bf16.mxu1 %v835_v1 }
   0x2   :  { %v19_v2 = vld [vmem:[%s993_s0] sm:$0xf]  ;;  %713 = vmatpush3.bf16.msra.mxu0 %v778_v0  ;;  %714 = vmatprep.mubr.msk.bf16.mxu0 %vm836_vm1, %v835_v1 }
   0x3   :  { %722 = vmatprep.mubr.msk.bf16.mxu1 %vm836_vm1, %v835_v1  ;;  %726 = vmatprep.subr.bf16.mxu0 %v835_v1 }
   0x5   :  { %715 = vmatmul.mubr.msk.bf16.vlgmr.msra.gmra.mxu0 %vm33_vm0, %v19_v2 }
   0x6   :  { %730 = vmatprep.mubr.msk.bf16.mxu0 %vm836_vm1, %v835_v1 }
   0x7   :  { %9 = vsyncpa [#allocation3], 0  ;;  %v653_v3 = vld [vmem:[%s996_s3] ss:$0 sm:$0xff]  ;;  %vm77_vm2 = vcmask 261120   ;;  %v779_v15 = vld [vmem:[%s994_s1 + $0x10] sm:$0xff]  }
   0x8   :  { %719 = vmatpush3.bf16.msra.mxu1 %v779_v15  ;;  %v780_v16 = vld [vmem:[%s994_s1 + $0x8] sm:$0xff]   ;;  %v656_v23 = vld [vmem:[%s996_s3 + $0x4] ss:$0 sm:$0xff]  ;;  %v660_v46 = vld [vmem:[%s996_s3 + $0x6] ss:$0 sm:$0xff]  ;;  %s837_s10 = smov 96  }
   0x9   :  { %720 = vmatprep.subr.bf16.mxu1 %v835_v1  ;;  %v781_v37 = vld [vmem:[%s995_s2 + $0x8] sm:$0xff]   ;;  %v782_v38 = vld [vmem:[%s995_s2] sm:$0xff]   ;;  %v784_v55 = vld [vmem:[%s994_s1 + $0x18] sm:$0xff]   ;;  %vm637_vm3 = vcmask 57344  }
   0xa   :  { %727 = vmatpush3.bf16.msra.mxu0 %v781_v37  ;;  %v783_v45 = vld [vmem:[%s994_s1 + $0x20] sm:$0xff]   ;;  %v665_v60 = vld [vmem:[%s996_s3 + $0x8] ss:$0 sm:$0xff] }
   0xb   :  { %728 = vmatprep.subr.bf16.mxu0 %v835_v1 }
   0xc   :  { %721 = vmatpush3.bf16.msra.mxu1 %v780_v16 }
   0xd   :  { %734 = vmatprep.subr.bf16.mxu1 %v835_v1 }
   0xe   :  { %729 = vmatpush3.bf16.msra.mxu0 %v782_v38 }
   0xf   :  { %742 = vmatprep.subr.bf16.mxu0 %v835_v1 }
  0xc5   :  { %v71_v4 = vpop.f32.mrf.mxu0 }
  0xc6   :  { %v72_v5 = vadd.f32 %v653_v3, %v71_v4 }
  0xc7   :  { %v716_v6 = vpop.f32.mrf.mxu0 }
  0xc8   :  { %v78_v7 = vsel %vm77_vm2, %v72_v5, 0.0  ;;  %v157_v26 = vmul.f32 2.0, %v72_v5 }
  0xc9   :  { %79 = vadd.xlane.f32.xlu0 %v78_v7  ;;  %v74_v8 = vpop.f32.mrf.mxu0 }
  0xcb   :  { %v717_v9 = vpop.f32.mrf.mxu0 }
 0x152   :  { %v80_v10 = vpop.xlane.xlu0 %79 }
 0x153   :  { %v82_v11 = vmul.f32 0.03125, %v80_v10  ;;  %v785_v10 = vld [vmem:[%s994_s1 + $0x30] sm:$0xff]  }
 0x155   :  { %v83_v12 = vsub.f32 %v72_v5, %v82_v11  ;;  %v786_v11 = vld [vmem:[%s994_s1 + $0x28] sm:$0xff]  }
 0x157   :  { %v84_v13 = vmul.f32 %v83_v12, %v83_v12 }
 0x159   :  { %v85_v14 = vsel %vm77_vm2, %v84_v13, 0.0 }
 0x15a   :  { %86 = vadd.xlane.f32.xlu0 %v85_v14 }
 0x1e3   :  { %v87_v17 = vpop.xlane.xlu0 %86 }
 0x1e4   :  { %v88_v18 = vmul.f32 0.03125, %v87_v17 }
 0x1e6   :  { %v89_v19 = vadd.f32 1e-05, %v88_v18  ;;  %v669_v18 = vld [vmem:[%s996_s3 + $0x5] ss:$0 sm:$0xff] }
 0x1e8   :  { %791 = vrsqrt.f32 %v89_v19 }
 0x1f5   :  { %v792_v20 = vpop.eup %791 }
 0x1f6   :  { %v91_v21 = vmul.f32 %v792_v20, %v83_v12 }
 0x1f8   :  { %v96_v22 = vpack.c.bf16 %v91_v21, %v91_v21 }
 0x1fa   :  { %723 = vmatmul.mubr.msk.bf16.vlgmr.msra.gmra.mxu1 %vm77_vm2, %v96_v22 }
 0x1fb   :  { %738 = vmatprep.mubr.msk.bf16.mxu1 %vm836_vm1, %v835_v1  ;;  %735 = vmatpush3.bf16.msra.mxu1 %v783_v45 }
 0x1fc   :  { %736 = vmatprep.subr.bf16.mxu1 %v835_v1 }
 0x1ff   :  { %737 = vmatpush3.bf16.msra.mxu1 %v784_v55 }
 0x200   :  { %750 = vmatprep.subr.bf16.mxu1 %v835_v1 }
 0x2ba   :  { %v151_v24 = vpop.f32.mrf.mxu1 }
 0x2bb   :  { %v152_v25 = vadd.f32 %v656_v23, %v151_v24 }
 0x2bc   :  { %v724_v27 = vpop.f32.mrf.mxu1 }
 0x2bd   :  { %v158_v28 = vadd.f32 %v157_v26, %v152_v25 }
 0x2be   :  { %v154_v29 = vpop.f32.mrf.mxu1 }
 0x2bf   :  { %v159_v30 = vsel %vm77_vm2, %v158_v28, 0.0 }
 0x2c0   :  { %160 = vadd.xlane.f32.xlu1 %v159_v30  ;;  %v725_v31 = vpop.f32.mrf.mxu1 }
 0x349   :  { %v161_v32 = vpop.xlane.xlu1 %160 }
 0x34a   :  { %v162_v33 = vmul.f32 0.03125, %v161_v32  ;;  %v787_v32 = vld [vmem:[%s995_s2 + $0x18] sm:$0xff]  }
 0x34c   :  { %v163_v34 = vsub.f32 %v158_v28, %v162_v33  ;;  %v788_v33 = vld [vmem:[%s995_s2 + $0x10] sm:$0xff]  }
 0x34e   :  { %v164_v35 = vmul.f32 %v163_v34, %v163_v34 }
 0x350   :  { %v165_v36 = vsel %vm77_vm2, %v164_v35, 0.0 }
 0x351   :  { %166 = vadd.xlane.f32.xlu1 %v165_v36 }
 0x3da   :  { %v167_v39 = vpop.xlane.xlu1 %166 }
 0x3db   :  { %v168_v40 = vmul.f32 0.03125, %v167_v39 }
 0x3dd   :  { %v169_v41 = vadd.f32 1e-05, %v168_v40  ;;  %v789_v40 = vld [vmem:[%s994_s1 + $0x40] sm:$0xff]  }
 0x3df   :  { %793 = vrsqrt.f32 %v169_v41  ;;  %v677_v41 = vld [vmem:[%s996_s3 + $0x7] ss:$0 sm:$0xff] }
 0x3ec   :  { %v794_v42 = vpop.eup %793 }
 0x3ed   :  { %v171_v43 = vmul.f32 %v794_v42, %v163_v34 }
 0x3ef   :  { %v176_v44 = vpack.c.bf16 %v171_v43, %v171_v43 }
 0x3f1   :  { %731 = vmatmul.mubr.msk.bf16.vlgmr.msra.gmra.mxu0 %vm77_vm2, %v176_v44 }
 0x3f2   :  { %746 = vmatprep.mubr.msk.bf16.mxu0 %vm836_vm1, %v835_v1  ;;  %743 = vmatpush3.bf16.msra.mxu0 %v785_v10  ;;  %v686_v10 = vld [vmem:[%s996_s3 + $0x1] ss:$0 sm:$0xff] }
 0x3f3   :  { %744 = vmatprep.subr.bf16.mxu0 %v835_v1 }
 0x3f6   :  { %745 = vmatpush3.bf16.msra.mxu0 %v786_v11 }
 0x3f7   :  { %758 = vmatprep.subr.bf16.mxu0 %v835_v1 }
 0x4b1   :  { %v231_v47 = vpop.f32.mrf.mxu0 }
 0x4b2   :  { %v232_v48 = vadd.f32 %v660_v46, %v231_v47 }
 0x4b3   :  { %v732_v49 = vpop.f32.mrf.mxu0 }
 0x4b4   :  { %v664_v50 = vmul.f32 -1.442695, %v232_v48 }
 0x4b5   :  { %v234_v51 = vpop.f32.mrf.mxu0 }
 0x4b6   :  { %795 = vpow2.f32 %v664_v50  ;;  %v790_v50 = vld [vmem:[%s994_s1 + $0x38] sm:$0xff]  }
 0x4b7   :  { %v733_v52 = vpop.f32.mrf.mxu0 }
 0x4c3   :  { %v796_v53 = vpop.eup %795 }
 0x4c4   :  { %v240_v54 = vadd.f32 1.0, %v796_v53 }
 0x4c6   :  { %797 = vrcp.f32 %v240_v54  ;;  %v682_v54 = vld [vmem:[%s996_s3 + $0x9] ss:$0 sm:$0xff] }
 0x4d3   :  { %v798_v56 = vpop.eup %797 }
 0x4d4   :  { %244 = vrot.lane.b32.xlu0 %v798_v56, %s837_s10 }
 0x546   :  { %v245_v57 = vpop.permute.xlu0 %244 }
 0x547   :  { %v247_v58 = vmul.f32 %v245_v57, %v232_v48 }
 0x549   :  { %v252_v59 = vpack.c.bf16 %v247_v58, %v247_v58 }
 0x54b   :  { %739 = vmatmul.mubr.msk.bf16.vlgmr.msra.gmra.mxu1 %vm77_vm2, %v252_v59 }
 0x54c   :  { %754 = vmatprep.mubr.msk.bf16.mxu1 %vm836_vm1, %v835_v1  ;;  %751 = vmatpush3.bf16.msra.mxu1 %v787_v32 }
 0x54d   :  { %752 = vmatprep.subr.bf16.mxu1 %v835_v1 }
 0x550   :  { %753 = vmatpush3.bf16.msra.mxu1 %v788_v33 }
 0x551   :  { %766 = vmatprep.subr.bf16.mxu1 %v835_v1 }
 0x60b   :  { %v307_v61 = vpop.f32.mrf.mxu1 }
 0x60c   :  { %v308_v62 = vadd.f32 %v665_v60, %v307_v61 }
 0x60d   :  { %v740_v63 = vpop.f32.mrf.mxu1 }
 0x60e   :  { %v313_v0 = vadd.f32 %v308_v62, %v158_v28 }
 0x60f   :  { %v310_v2 = vpop.f32.mrf.mxu1 }
 0x610   :  { %v314_v3 = vsel %vm77_vm2, %v313_v0, 0.0  ;;  %v392_v21 = vmul.f32 2.0, %v313_v0 }
 0x611   :  { %315 = vadd.xlane.f32.xlu1 %v314_v3  ;;  %v741_v4 = vpop.f32.mrf.mxu1 }
 0x612   :  { %v624_v4 = vld [vmem:[%s996_s3 + $0x3] sm:$0x1] }
 0x69a   :  { %v316_v5 = vpop.xlane.xlu1 %315 }
 0x69b   :  { %v317_v6 = vmul.f32 0.03125, %v316_v5  ;;  %v838_v5 = vmov 0  }
 0x69c   :  { %777 = vset.pattern.permute.xlu0 %v838_v5 }
 0x69d   :  { %v318_v7 = vsub.f32 %v313_v0, %v317_v6 }
 0x69f   :  { %v319_v8 = vmul.f32 %v318_v7, %v318_v7 }
 0x6a1   :  { %v320_v9 = vsel %vm77_vm2, %v319_v8, 0.0 }
 0x6a2   :  { %321 = vadd.xlane.f32.xlu1 %v320_v9 }
 0x72b   :  { %v322_v12 = vpop.xlane.xlu1 %321 }
 0x72c   :  { %v323_v13 = vmul.f32 0.03125, %v322_v12  ;;  %v687_v12 = vld [vmem:[%s996_s3 + $0x2] ss:$0 sm:$0xff]  ;;  %s839_s3 = smov [#allocation2]  }
 0x72d   :  { %s645_s11 = sshll.u32 %s839_s3, 4  ;;  %s646_s11 = int_to_ptr.vmem [resolvable:$true] %s645_s11 }
 0x72e   :  { %v324_v14 = vadd.f32 1e-05, %v323_v13  ;;  %s817_s12 = scalar_lea.vmem %s646_s11, 32  ;;  %p818_p1 = scmp.lt.s32.totalorder %s646_s11, %s646_s11 }
 0x730   :  { %799 = vrsqrt.f32 %v324_v14 }
 0x73d   :  { %v800_v15 = vpop.eup %799 }
 0x73e   :  { %v326_v16 = vmul.f32 %v800_v15, %v318_v7 }
 0x740   :  { %v331_v17 = vpack.c.bf16 %v326_v16, %v326_v16 }
 0x742   :  { %747 = vmatmul.mubr.msk.bf16.vlgmr.msra.gmra.mxu0 %vm77_vm2, %v331_v17 }
 0x743   :  { %762 = vmatprep.mubr.msk.bf16.mxu0 %vm836_vm1, %v835_v1  ;;  %759 = vmatpush3.bf16.msra.mxu0 %v789_v40 }
 0x744   :  { %760 = vmatprep.subr.bf16.mxu0 %v835_v1 }
 0x747   :  { %761 = vmatpush3.bf16.msra.mxu0 %v790_v50 }
 0x802   :  { %v386_v19 = vpop.f32.mrf.mxu0 }
 0x803   :  { %v387_v20 = vadd.f32 %v669_v18, %v386_v19  ;;  %v577_v18 = vld [vmem:[%s994_s1 + $0x48] sm:$0xf]  ;;  %s813_s1 = scalar_lea.vmem %s646_s11, 16 }
 0x804   :  { %v748_v22 = vpop.f32.mrf.mxu0  ;;  %p814_p0 = scmp.ne.s32.totalorder %s646_s11, %s813_s1  ;;  %p819_p2 = scmp.lt.s32.totalorder %s817_s12, %s813_s1 }
 0x805   :  { %v393_v23 = vadd.f32 %v392_v21, %v387_v20 }
 0x806   :  { %v389_v24 = vpop.f32.mrf.mxu0  ;;  %p820_p3 = por %p819_p2, %p818_p1 }
 0x807   :  { %v394_v25 = vsel %vm77_vm2, %v393_v23, 0.0 }
 0x808   :  { %395 = vadd.xlane.f32.xlu1 %v394_v25  ;;  %v749_v26 = vpop.f32.mrf.mxu0  ;;  %p821_p4 = pnand %p820_p3, %p814_p0 }
 0x891   :  { %v396_v27 = vpop.xlane.xlu1 %395 }
 0x892   :  { %v397_v28 = vmul.f32 0.03125, %v396_v27 }
 0x894   :  { %v398_v29 = vsub.f32 %v393_v23, %v397_v28 }
 0x896   :  { %v399_v30 = vmul.f32 %v398_v29, %v398_v29 }
 0x898   :  { %v400_v31 = vsel %vm77_vm2, %v399_v30, 0.0 }
 0x899   :  { %401 = vadd.xlane.f32.xlu1 %v400_v31 }
 0x922   :  { %v402_v34 = vpop.xlane.xlu1 %401 }
 0x923   :  { %v403_v35 = vmul.f32 0.03125, %v402_v34 }
 0x925   :  { %v404_v36 = vadd.f32 1e-05, %v403_v35 }
 0x927   :  { %801 = vrsqrt.f32 %v404_v36 }
 0x934   :  { %v802_v37 = vpop.eup %801 }
 0x935   :  { %v406_v38 = vmul.f32 %v802_v37, %v398_v29 }
 0x937   :  { %v412_v39 = vpack.c.bf16 %v406_v38, %v406_v38 }
 0x939   :  { %755 = vmatmul.mubr.msk.bf16.vlgmr.msra.gmra.mxu1 %vm77_vm2, %v412_v39 }
 0x93a   :  { %768 = vmatprep.mubr.msk.bf16.mxu1 %vm836_vm1, %v835_v1 }
 0x9f9   :  { %v467_v42 = vpop.f32.mrf.mxu1 }
 0x9fa   :  { %v468_v43 = vadd.f32 %v677_v41, %v467_v42 }
 0x9fb   :  { %v756_v44 = vpop.f32.mrf.mxu1 }
 0x9fc   :  { %v681_v45 = vmul.f32 -1.442695, %v468_v43 }
 0x9fd   :  { %v470_v46 = vpop.f32.mrf.mxu1 }
 0x9fe   :  { %803 = vpow2.f32 %v681_v45 }
 0x9ff   :  { %v757_v47 = vpop.f32.mrf.mxu1 }
 0xa0b   :  { %v804_v48 = vpop.eup %803 }
 0xa0c   :  { %v476_v49 = vadd.f32 1.0, %v804_v48 }
 0xa0e   :  { %805 = vrcp.f32 %v476_v49 }
 0xa1b   :  { %v806_v1 = vpop.eup %805 }
 0xa1c   :  { %480 = vrot.lane.b32.xlu1 %v806_v1, %s837_s10 }
 0xa8e   :  { %v481_v51 = vpop.permute.xlu1 %480 }
 0xa8f   :  { %v483_v52 = vmul.f32 %v481_v51, %v468_v43 }
 0xa91   :  { %v488_v53 = vpack.c.bf16 %v483_v52, %v483_v52 }
 0xa93   :  { %763 = vmatmul.mubr.msk.bf16.vlgmr.msra.gmra.mxu0 %vm77_vm2, %v488_v53 }
 0xb53   :  { %v543_v55 = vpop.f32.mrf.mxu0 }
 0xb54   :  { %v544_v56 = vadd.f32 %v682_v54, %v543_v55 }
 0xb55   :  { %v764_v57 = vpop.f32.mrf.mxu0 }
 0xb56   :  { %v549_v58 = vadd.f32 %v544_v56, %v393_v23 }
 0xb57   :  { %v546_v59 = vpop.f32.mrf.mxu0 }
 0xb58   :  { %v550_v60 = vsel %vm77_vm2, %v549_v58, 0.0 }
 0xb59   :  { %551 = vadd.xlane.f32.xlu0 %v550_v60  ;;  %v765_v61 = vpop.f32.mrf.mxu0 }
 0xb6f   :  { %627 = vperm.xlu0 %777, %v624_v4  }
 0xbe2   :  { %v552_v62 = vpop.xlane.xlu0 %551 }
 0xbe3   :  { %v553_v63 = vmul.f32 0.03125, %v552_v62 }
 0xbe5   :  { %v554_v0 = vsub.f32 %v549_v58, %v553_v63 }
 0xbe7   :  { %v555_v2 = vmul.f32 %v554_v0, %v554_v0 }
 0xbe9   :  { %v556_v3 = vsel %vm77_vm2, %v555_v2, 0.0 }
 0xbea   :  { %557 = vadd.xlane.f32.xlu1 %v556_v3  ;;  %v628_v19 = vpop.permute.xlu0 %627 }
 0xc73   :  { %v558_v6 = vpop.xlane.xlu1 %557 }
 0xc74   :  { %v559_v7 = vmul.f32 0.03125, %v558_v6 }
 0xc76   :  { %v560_v8 = vadd.f32 1e-05, %v559_v7 }
 0xc78   :  { %807 = vrsqrt.f32 %v560_v8 }
 0xc85   :  { %v808_v9 = vpop.eup %807 }
 0xc86   :  { %v562_v11 = vmul.f32 %v808_v9, %v554_v0 }
 0xc88   :  { %v568_v13 = vmul.f32 %v686_v10, %v562_v11 }
 0xc8a   :  { %v574_v14 = vadd.f32 %v687_v12, %v568_v13 }
 0xc8c   :  { %v575_v15 = vmax.f32 %v574_v14, 0.0 }
 0xc8e   :  { %v576_v16 = vpack.c.bf16 %v575_v15, %v575_v15 }
 0xc90   :  { %v582_v17 = vsel %vm77_vm2, %v576_v16, 0 }
 0xc91   :  { %767 = vmatpush3.bf16.xpose.msra.mxu1 %v582_v17 }
 0xc98   :  { %769 = vmatmul.mubr.msk.bf16.vlgmr.msra.gmra.mxu1 %vm77_vm2, %v577_v18 }
 0xd58   :  { %v618_v20 = vpop.f32.mrf.mxu1 }
 0xd59   :  { %v630_v21 = vadd.f32 %v628_v19, %v618_v20 }
 0xd5a   :  { %v770_v22 = vpop.f32.mrf.mxu1 }
 0xd5b   :  { %v689_v23 = vmul.f32 -1.442695, %v630_v21 }
 0xd5c   :  { %v621_v24 = vpop.f32.mrf.mxu1 }
 0xd5d   :  { %809 = vpow2.f32 %v689_v23 }
 0xd5e   :  { %v771_v25 = vpop.f32.mrf.mxu1 }
 0xd6a   :  { %v810_v26 = vpop.eup %809 }
 0xd6b   :  { %v634_v27 = vadd.f32 1.0, %v810_v26 }
 0xd6d   :  { %811 = vrcp.f32 %v634_v27 }
 0xd7a   :  { %v812_v28 = vpop.eup %811 }
 0xd7b   :  { %638 = vst.msk [vmem:[#allocation2] sm:$0x1] %vm637_vm3, %v812_v28 }
 0xd7c   :  { %824 = shalt.err (!%p821_p4)
}
 0xd7d   :  { %648 = dma.vmem_to_hbm [thread:$0]  %s646_s11, 16, %s997_s4, [#allocation3]  }
 0xd7e   :  { %833 = dma.done.wait [#allocation3], 16  }
 0xd7f   :  { %834 = vsyncadd [#allocation3], 4294967280 }
 0xd80   :  { %652 = vsyncpa [#allocation3], 1 }

</bundles_post_ra>
